<compile_context>
chip_gen: v7x
topology: tpu7x:2x2x1
jax: 0.10.0
libtpu: 0.0.40
codegen_flags: <defaults>
</compile_context>

<pallas_src>
import jax
import jax.numpy as jnp
from jax.experimental import pallas as pl
from jax.experimental.pallas import tpu as pltpu


def _round_up(x, m):
    return (x + m - 1) // m * m


def _mask_head_kernel(x_ref, w1_ref, b1_ref, w2_ref, b2_ref, o_ref):
    """Fused ConvTranspose2d(k=2,s=2) + ReLU + Conv2d(1x1) over one row tile.

    x_ref : (TN, Cin)        bf16 grid features (channels-last rows)
    w1_ref: (Cin, 4*Cout)    bf16 fused deconv weights, tap k = kh*2+kw at cols [k*Cout:(k+1)*Cout]
    b1_ref: (1, 4*Cout)      f32 deconv bias tiled per tap
    w2_ref: (4*Cout, 4*Cp)   bf16 block-diagonal 1x1-conv weights (Cp = classes padded)
    b2_ref: (1, 4*Cp)        f32 1x1-conv bias tiled per tap (zero-padded)
    o_ref : (TN, 4*Cp)       f32 per-tap mask logits; 4*Cp % 128 == 0 -> lane-dense stores
    """
    # One wide MXU matmul covers all 4 deconv taps; f32 accumulation.
    h = jnp.dot(x_ref[...], w1_ref[...], preferred_element_type=jnp.float32)
    h = jnp.maximum(h + b1_ref[...], 0.0)                      # bias + ReLU, full tile at once
    # One block-diagonal matmul applies the shared 1x1 conv to every tap (K = 4*Cout = 128).
    y = jnp.dot(h.astype(w2_ref.dtype), w2_ref[...], preferred_element_type=jnp.float32)
    o_ref[...] = y + b2_ref[...]


def prepare_mask_head_params(w_deconv, b_deconv, w_pred, b_pred, *,
                             compute_dtype=jnp.bfloat16):
    """One-time weight preprocessing (hoisted out of the per-call forward)."""
    cin, cout = w_deconv.shape[0], w_deconv.shape[1]
    num_classes = w_pred.shape[0]
    # Pad classes so the kernel output last dim (4*Cp) is a multiple of 128 lanes.
    ccls_pad = _round_up(max(num_classes, 1), 32)

    # ConvTranspose2d weight (Cin, Cout, 2, 2) -> (Cin, 4*Cout), tap k = kh*2 + kw (tap-major cols).
    w1 = jnp.transpose(w_deconv, (2, 3, 0, 1)).reshape(4, cin, cout)
    w1 = jnp.transpose(w1, (1, 0, 2)).reshape(cin, 4 * cout).astype(compute_dtype)
    b1 = jnp.tile(b_deconv.astype(jnp.float32), 4)[None, :]          # (1, 4*Cout)

    # Conv2d 1x1 weight (Ccls, Cout, 1, 1) -> (Cout, Cp) zero-padded, then block-diag over taps.
    w2 = jnp.transpose(w_pred[:, :, 0, 0], (1, 0))                   # (Cout, Ccls)
    w2 = jnp.pad(w2, ((0, 0), (0, ccls_pad - num_classes)))
    w2_blk = jnp.kron(jnp.eye(4, dtype=w2.dtype), w2).astype(compute_dtype)   # (4*Cout, 4*Cp)
    b2 = jnp.pad(b_pred.astype(jnp.float32), (0, ccls_pad - num_classes))
    b2_blk = jnp.tile(b2, 4)[None, :]                                # (1, 4*Cp)

    return dict(w1=w1, b1=b1, w2_blk=w2_blk, b2_blk=b2_blk,
                out_dim=cout, num_classes=num_classes, ccls_pad=ccls_pad,
                compute_dtype=compute_dtype)


def defgrid_mask_head_forward(gcn_pred_points, params, grid_size, *, row_tile=512):
    """Returns mask_logits with PyTorch NCHW semantics: (B, num_classes, 2*gh, 2*gw)."""
    gh, gw = grid_size
    out_dim = params["out_dim"]
    num_classes = params["num_classes"]
    ccls_pad = params["ccls_pad"]
    compute_dtype = params["compute_dtype"]

    # --- glue: mirror `gcn_pred_points.reshape(-1, out_dim, gh, gw)` (NCHW) ---
    mf = gcn_pred_points.reshape(-1, out_dim, gh, gw)
    batch = mf.shape[0]

    # NCHW -> channels-last flattened rows; bf16 for native MXU throughput.
    x_flat = jnp.transpose(mf, (0, 2, 3, 1)).reshape(batch * gh * gw, out_dim)
    x_flat = x_flat.astype(compute_dtype)

    n_rows = batch * gh * gw
    assert row_tile % 8 == 0
    tn = min(row_tile, _round_up(n_rows, 8))        # single grid step for small batches
    padded_rows = _round_up(n_rows, tn)
    if padded_rows != n_rows:
        x_flat = jnp.pad(x_flat, ((0, padded_rows - n_rows), (0, 0)))

    out_flat = pl.pallas_call(
        _mask_head_kernel,
        out_shape=jax.ShapeDtypeStruct((padded_rows, 4 * ccls_pad), jnp.float32),
        grid=(padded_rows // tn,),
        in_specs=[
            pl.BlockSpec((tn, out_dim), lambda i: (i, 0)),
            pl.BlockSpec((out_dim, 4 * out_dim), lambda i: (0, 0)),
            pl.BlockSpec((1, 4 * out_dim), lambda i: (0, 0)),
            pl.BlockSpec((4 * out_dim, 4 * ccls_pad), lambda i: (0, 0)),
            pl.BlockSpec((1, 4 * ccls_pad), lambda i: (0, 0)),
        ],
        out_specs=pl.BlockSpec((tn, 4 * ccls_pad), lambda i: (i, 0)),
        compiler_params=pltpu.CompilerParams(dimension_semantics=("parallel",)),
    )(x_flat, params["w1"], params["b1"], params["w2_blk"], params["b2_blk"])

    # --- glue: drop row/class padding and scatter the 4 taps into the 2x-upsampled NCHW map ---
    y = out_flat[:n_rows].reshape(batch, gh, gw, 2, 2, ccls_pad)[..., :num_classes]
    y = jnp.transpose(y, (0, 5, 1, 3, 2, 4))                        # (B, C, i, kh, j, kw)
    return y.reshape(batch, num_classes, 2 * gh, 2 * gw)


def _reference(gcn_pred_points, w_deconv, b_deconv, w_pred, b_pred, grid_size):
    """Pure-JAX f32 reference of the same math (for the correctness check)."""
    gh, gw = grid_size
    out_dim = w_deconv.shape[0]
    mf = gcn_pred_points.reshape(-1, out_dim, gh, gw)
    b = mf.shape[0]
    de = jnp.einsum("bcij,cokl->boikjl", mf, w_deconv)
    de = de + b_deconv[None, :, None, None, None, None]
    de = de.reshape(b, out_dim, 2 * gh, 2 * gw)
    de = jnp.maximum(de, 0.0)
    logits = jnp.einsum("bchw,kc->bkhw", de, w_pred[:, :, 0, 0]) + b_pred[None, :, None, None]
    return logits


if __name__ == "__main__":
    # Small synthetic config: grid_size=(8,8), out_dim=32, num_classes=8,
    # 2 predicted masks, ROI features x = (2, 8, 14, 14) (unused: see TODO above).
    grid_size = (8, 8)
    out_dim = 32
    num_classes = 8
    n_masks = 2

    key = jax.random.PRNGKey(0)
    k_x, k_gcn, k_w1, k_b1, k_w2, k_b2, k_cls = jax.random.split(key, 7)

    x = jax.random.normal(k_x, (2, 8, 14, 14), dtype=jnp.float32)  # ROI features (NCHW)
    gcn_pred_points = jax.random.normal(
        k_gcn, (n_masks, out_dim * grid_size[0] * grid_size[1]), dtype=jnp.float32)

    # Deterministic parameter init (shapes from the module's __init__).
    w_deconv = 0.05 * jax.random.normal(k_w1, (out_dim, out_dim, 2, 2), dtype=jnp.float32)
    b_deconv = 0.05 * jax.random.normal(k_b1, (out_dim,), dtype=jnp.float32)
    w_pred = 0.05 * jax.random.normal(k_w2, (num_classes, out_dim, 1, 1), dtype=jnp.float32)
    b_pred = 0.05 * jax.random.normal(k_b2, (num_classes,), dtype=jnp.float32)

    # Weight preprocessing done ONCE (not per forward).
    params = prepare_mask_head_params(w_deconv, b_deconv, w_pred, b_pred)

    mask_logits = defgrid_mask_head_forward(gcn_pred_points, params, grid_size)
    mask_logits = jax.block_until_ready(mask_logits)
    assert mask_logits.shape == (n_masks, num_classes, 2 * grid_size[0], 2 * grid_size[1])

    # Correctness check against the pure-JAX f32 reference (bf16 inputs, f32 accumulation).
    ref = _reference(gcn_pred_points, w_deconv, b_deconv, w_pred, b_pred, grid_size)
    assert jnp.allclose(mask_logits, ref, atol=1e-2, rtol=2e-2), "mismatch vs reference"

    # Eval-path mask_rcnn_inference (glue): per-instance class select + sigmoid.
    pred_classes = jax.random.randint(k_cls, (n_masks,), 0, num_classes)
    pred_masks = jax.nn.sigmoid(mask_logits[jnp.arange(n_masks), pred_classes])
    jax.block_until_ready(pred_masks)

    print("KERNEL_OK")
</pallas_src>

<mosaic_0001>
module attributes {stable_mosaic.version = 11 : i64} {
  func.func @_mask_head_kernel(%arg0: i32, %arg1: memref<128x32xbf16, #tpu.memory_space<vmem>>, %arg2: memref<32x128xbf16, #tpu.memory_space<vmem>>, %arg3: memref<1x128xf32, #tpu.memory_space<vmem>>, %arg4: memref<128x128xbf16, #tpu.memory_space<vmem>>, %arg5: memref<1x128xf32, #tpu.memory_space<vmem>>, %arg6: memref<128x128xf32, #tpu.memory_space<vmem>>) attributes {dimension_semantics = [#tpu.dimension_semantics<parallel>], iteration_bounds = array<i64: 1>, scalar_prefetch = 0 : i64, scratch_operands = 0 : i64, tpu.core_type = #tpu.core_type<tc>, window_params = [{transform_indices = @transform_0, window_bounds = array<i64: 128, 32>}, {pipeline_mode = #tpu.pipeline_mode<synchronous>, transform_indices = @transform_1, window_bounds = array<i64: 32, 128>}, {pipeline_mode = #tpu.pipeline_mode<synchronous>, transform_indices = @transform_2, window_bounds = array<i64: 1, 128>}, {pipeline_mode = #tpu.pipeline_mode<synchronous>, transform_indices = @transform_3, window_bounds = array<i64: 128, 128>}, {pipeline_mode = #tpu.pipeline_mode<synchronous>, transform_indices = @transform_4, window_bounds = array<i64: 1, 128>}, {transform_indices = @transform_5, window_bounds = array<i64: 128, 128>}]} {
    %c0 = arith.constant 0 : index
    %c0_0 = arith.constant 0 : index
    %0 = vector.load %arg1[%c0, %c0_0] : memref<128x32xbf16, #tpu.memory_space<vmem>>, vector<128x32xbf16>
    %c0_1 = arith.constant 0 : index
    %c0_2 = arith.constant 0 : index
    %1 = vector.load %arg2[%c0_1, %c0_2] : memref<32x128xbf16, #tpu.memory_space<vmem>>, vector<32x128xbf16>
    %cst = arith.constant dense<0.000000e+00> : vector<128x128xf32>
    %2 = tpu.matmul %0, %1, %cst {dimension_numbers = #tpu.dot_dimension_numbers<[1], [0], [0], [1], [0, 0, 1, 1], [], []>} : vector<128x32xbf16>, vector<32x128xbf16>, vector<128x128xf32> -> vector<128x128xf32>
    %c0_3 = arith.constant 0 : index
    %c0_4 = arith.constant 0 : index
    %3 = vector.load %arg3[%c0_3, %c0_4] : memref<1x128xf32, #tpu.memory_space<vmem>>, vector<1x128xf32>
    %4 = vector.broadcast %3 : vector<1x128xf32> to vector<128x128xf32>
    %5 = arith.addf %2, %4 : vector<128x128xf32>
    %cst_5 = arith.constant 0.000000e+00 : f32
    %6 = vector.broadcast %cst_5 : f32 to vector<128x128xf32>
    %7 = arith.maximumf %5, %6 : vector<128x128xf32>
    %8 = arith.truncf %7 : vector<128x128xf32> to vector<128x128xbf16>
    %c0_6 = arith.constant 0 : index
    %c0_7 = arith.constant 0 : index
    %9 = vector.load %arg4[%c0_6, %c0_7] : memref<128x128xbf16, #tpu.memory_space<vmem>>, vector<128x128xbf16>
    %cst_8 = arith.constant dense<0.000000e+00> : vector<128x128xf32>
    %10 = tpu.matmul %8, %9, %cst_8 {dimension_numbers = #tpu.dot_dimension_numbers<[1], [0], [0], [1], [0, 0, 1, 1], [], []>} : vector<128x128xbf16>, vector<128x128xbf16>, vector<128x128xf32> -> vector<128x128xf32>
    %c0_9 = arith.constant 0 : index
    %c0_10 = arith.constant 0 : index
    %11 = vector.load %arg5[%c0_9, %c0_10] : memref<1x128xf32, #tpu.memory_space<vmem>>, vector<1x128xf32>
    %12 = vector.broadcast %11 : vector<1x128xf32> to vector<128x128xf32>
    %13 = arith.addf %10, %12 : vector<128x128xf32>
    %c0_11 = arith.constant 0 : index
    %c0_12 = arith.constant 0 : index
    %14 = vector.load %arg6[%c0_11, %c0_12] : memref<128x128xf32, #tpu.memory_space<vmem>>, vector<128x128xf32>
    tpu.vector_store %arg6[%c0_11, %c0_12], %13 {strides = array<i32>} : memref<128x128xf32, #tpu.memory_space<vmem>>, vector<128x128xf32>,
    return
  }
  func.func @transform_0(%arg0: i32) -> (i32, i32) {
    %c0_i32 = arith.constant 0 : i32
    %c0_i32_0 = arith.constant 0 : i32
    return %arg0, %c0_i32 : i32, i32
  }
  func.func @transform_1(%arg0: i32) -> (i32, i32) {
    %c0_i32 = arith.constant 0 : i32
    %c0_i32_0 = arith.constant 0 : i32
    %c0_i32_1 = arith.constant 0 : i32
    return %c0_i32, %c0_i32_0 : i32, i32
  }
  func.func @transform_2(%arg0: i32) -> (i32, i32) {
    %c0_i32 = arith.constant 0 : i32
    %c0_i32_0 = arith.constant 0 : i32
    %c0_i32_1 = arith.constant 0 : i32
    return %c0_i32, %c0_i32_0 : i32, i32
  }
  func.func @transform_3(%arg0: i32) -> (i32, i32) {
    %c0_i32 = arith.constant 0 : i32
    %c0_i32_0 = arith.constant 0 : i32
    %c0_i32_1 = arith.constant 0 : i32
    return %c0_i32, %c0_i32_0 : i32, i32
  }
  func.func @transform_4(%arg0: i32) -> (i32, i32) {
    %c0_i32 = arith.constant 0 : i32
    %c0_i32_0 = arith.constant 0 : i32
    %c0_i32_1 = arith.constant 0 : i32
    return %c0_i32, %c0_i32_0 : i32, i32
  }
  func.func @transform_5(%arg0: i32) -> (i32, i32) {
    %c0_i32 = arith.constant 0 : i32
    %c0_i32_0 = arith.constant 0 : i32
    return %arg0, %c0_i32 : i32, i32
  }
}

</mosaic_0001>

<bundles_post_ra>
// kernel: tpu_custom_call.1
= control target key start
LH: loop header
LB: loop body
LE: loop exit
PB: predicated region body
PF: predicated region fallthrough
CT: control target
= control target key end

     0   :  { %vm101_vm0 = vcmask 261120   ;;  %s727_s0 = inlined_call_operand.vmem [shape: bf16[128,32], index: 0, kind: input, shape index: {}]   ;;  %s728_s1 = inlined_call_operand.vmem [shape: bf16[32,128], index: 1, kind: input, shape index: {}]   ;;  %s729_s2 = inlined_call_operand.vmem [shape: f32[1,128], index: 2, kind: input, shape index: {}]   ;;  %s730_s3 = inlined_call_operand.vmem [shape: bf16[128,128], index: 3, kind: input, shape index: {}]   ;;  %s731_s4 = inlined_call_operand.vmem [shape: f32[1,128], index: 4, kind: input, shape index: {}]   ;;  %s732_s5 = inlined_call_operand.hbm [shape: f32[128,128], index: 5, kind: output, shape index: {}]  }
   0x1   :  { %v572_v0 = vld [vmem:[%s728_s1] sm:$0xff]   ;;  %v573_v1 = vld [vmem:[%s728_s1 + $0x8] sm:$0xff]   ;;  %v576_v4 = vld [vmem:[%s727_s0 + $0x10] sm:$0xff]  }
   0x2   :  { %501 = vmatprep.subr.bf16.mxu0 %v572_v0  ;;  %v574_v2 = vld [vmem:[%s727_s0] sm:$0xff]   ;;  %v575_v3 = vld [vmem:[%s727_s0 + $0x8] sm:$0xff]   ;;  %v577_v7 = vld [vmem:[%s727_s0 + $0x18] sm:$0xff]  }
   0x3   :  { %502 = vmatpush3.bf16.msra.mxu0 %v572_v0  ;;  %505 = vmatprep.mubr.msk.bf16.mxu0 %vm101_vm0, %v574_v2  ;;  %v582_v5 = vld [vmem:[%s730_s3] sm:$0xff]   ;;  %v583_v6 = vld [vmem:[%s730_s3 + $0x8] sm:$0xff]   ;;  %v584_v8 = vld [vmem:[%s730_s3 + $0x10] sm:$0xff]  }
   0x4   :  { %503 = vmatprep.subr.bf16.mxu0 %v573_v1  ;;  %553 = vmatprep.subr.bf16.mxu1 %v582_v5  ;;  %v578_v9 = vld [vmem:[%s727_s0 + $0x20] sm:$0xff]  }
   0x5   :  { %561 = vmatpush3.bf16.msra.mxu1 %v582_v5 }
   0x6   :  { %554 = vmatprep.subr.bf16.mxu1 %v583_v6 }
   0x7   :  { %504 = vmatpush3.bf16.msra.mxu0 %v573_v1 }
   0x8   :  { %521 = vmatprep.subr.bf16.mxu0 %v582_v5 }
   0x9   :  { %562 = vmatpush3.bf16.msra.mxu1 %v583_v6 }
   0xa   :  { %506 = vmatmul.mubr.msk.bf16.vlgmr.msra.gmra.mrb[0].mxu0 %vm101_vm0, %v575_v3 }
   0xb   :  { %509 = vmatprep.mubr.msk.bf16.mxu0 %vm101_vm0, %v576_v4  ;;  %522 = vmatpush3.bf16.msra.mxu0 %v582_v5 }
   0xc   :  { %523 = vmatprep.subr.bf16.mxu0 %v583_v6 }
   0xf   :  { %524 = vmatpush3.bf16.msra.mxu0 %v583_v6 }
  0x10   :  { %10 = vsyncpa [#allocation3], 0  ;;  %525 = vmatprep.subr.bf16.mxu0 %v584_v8  ;;  %v585_v10 = vld [vmem:[%s730_s3 + $0x18] sm:$0xff]   ;;  %555 = vmatprep.subr.bf16.mxu1 %v584_v8  ;;  %v579_v11 = vld [vmem:[%s727_s0 + $0x28] sm:$0xff]  }
  0x11   :  { %563 = vmatpush3.bf16.msra.mxu1 %v584_v8  ;;  %v586_v12 = vld [vmem:[%s730_s3 + $0x20] sm:$0xff]   ;;  %v580_v13 = vld [vmem:[%s727_s0 + $0x30] sm:$0xff]   ;;  %v587_v14 = vld [vmem:[%s730_s3 + $0x28] sm:$0xff]  }
  0x12   :  { %510 = vmatmul.mubr.msk.bf16.gmra.mrb[4].mxu0 %vm101_vm0, %v577_v7  ;;  %556 = vmatprep.subr.bf16.mxu1 %v585_v10  ;;  %v581_v15 = vld [vmem:[%s727_s0 + $0x38] sm:$0xff]   ;;  %v588_v16 = vld [vmem:[%s730_s3 + $0x30] sm:$0xff]   ;;  %v447_v18 = vld [vmem:[%s729_s2] ss:$0 sm:$0xff] }
  0x13   :  { %513 = vmatprep.mubr.msk.bf16.mxu0 %vm101_vm0, %v578_v9  ;;  %526 = vmatpush3.bf16.msra.mxu0 %v584_v8  ;;  %v589_v17 = vld [vmem:[%s730_s3 + $0x38] sm:$0xff]  }
  0x14   :  { %527 = vmatprep.subr.bf16.mxu0 %v585_v10 }
  0x15   :  { %564 = vmatpush3.bf16.msra.mxu1 %v585_v10 }
  0x16   :  { %557 = vmatprep.subr.bf16.mxu1 %v586_v12 }
  0x17   :  { %528 = vmatpush3.bf16.msra.mxu0 %v585_v10 }
  0x18   :  { %529 = vmatprep.subr.bf16.mxu0 %v586_v12 }
  0x19   :  { %565 = vmatpush3.bf16.msra.mxu1 %v586_v12 }
  0x1a   :  { %514 = vmatmul.mubr.msk.bf16.gmra.mrb[8].mxu0 %vm101_vm0, %v579_v11  ;;  %558 = vmatprep.subr.bf16.mxu1 %v587_v14  ;;  %v466_v11 = vld [vmem:[%s731_s4] ss:$0 sm:$0xff]  ;;  %s614_s4 = smov [#allocation2]  }
  0x1b   :  { %517 = vmatprep.mubr.msk.bf16.mxu0 %vm101_vm0, %v580_v13  ;;  %530 = vmatpush3.bf16.msra.mxu0 %v586_v12  ;;  %s436_s28 = sshll.u32 %s614_s4, 4  ;;  %s437_s28 = int_to_ptr.vmem [resolvable:$true] %s436_s28 }
  0x1c   :  { %531 = vmatprep.subr.bf16.mxu0 %v587_v14  ;;  %s590_s29 = scalar_lea.vmem %s437_s28, 2048  ;;  %p595_p1 = scmp.lt.s32.totalorder %s437_s28, %s437_s28 }
  0x1d   :  { %566 = vmatpush3.bf16.msra.mxu1 %v587_v14  ;;  %p591_p0 = scmp.ne.s32.totalorder %s437_s28, %s590_s29  ;;  %p596_p2 = scmp.lt.s32.totalorder %s590_s29, %s590_s29 }
  0x1e   :  { %559 = vmatprep.subr.bf16.mxu1 %v588_v16 }
  0x1f   :  { %532 = vmatpush3.bf16.msra.mxu0 %v587_v14  ;;  %p597_p3 = por %p596_p2, %p595_p1 }
  0x20   :  { %533 = vmatprep.subr.bf16.mxu0 %v588_v16 }
  0x21   :  { %567 = vmatpush3.bf16.msra.mxu1 %v588_v16  ;;  %p598_p4 = pnand %p597_p3, %p591_p0 }
  0x22   :  { %518 = vmatmul.mubr.msk.bf16.gmra.mrb[12].mxu0 %vm101_vm0, %v581_v15  ;;  %560 = vmatprep.subr.bf16.mxu1 %v589_v17 }
  0x23   :  { %534 = vmatpush3.bf16.msra.mxu0 %v588_v16 }
  0x24   :  { %535 = vmatprep.subr.bf16.mxu0 %v589_v17 }
  0x25   :  { %568 = vmatpush3.bf16.msra.mxu1 %v589_v17 }
  0x27   :  { %536 = vmatpush3.bf16.msra.mxu0 %v589_v17 }
  0xdd   :  { %v507_v19 = vpop.f32.mrb[0].mxu0 }
  0xde   :  { %v169_v20 = vadd.f32 %v507_v19, %v447_v18  ;;  %v160_v21 = vpop.f32.mrb[1].mxu0 }
  0xdf   :  { %v161_v22 = vadd.f32 %v447_v18, %v160_v21  ;;  %v508_v23 = vpop.f32.mrb[2].mxu0 }
  0xe0   :  { %v172_v24 = vadd.f32 %v508_v23, %v447_v18  ;;  %v163_v25 = vpop.f32.mrb[3].mxu0  ;;  %v225_v27 = vmax.f32 %v169_v20, 0.0 }
  0xe1   :  { %v164_v26 = vadd.f32 %v447_v18, %v163_v25  ;;  %v223_v29 = vmax.f32 %v161_v22, 0.0 }
  0xe2   :  { %v226_v28 = vmax.f32 %v172_v24, 0.0 }
  0xe3   :  { %v224_v30 = vmax.f32 %v164_v26, 0.0 }
  0xe4   :  { %v240_v31 = vpack.c.bf16 %v226_v28, %v225_v27 }
  0xe5   :  { %v239_v32 = vpack.c.bf16 %v224_v30, %v223_v29  ;;  %v511_v33 = vpop.f32.mrb[4].mxu0 }
  0xe6   :  { %v185_v34 = vadd.f32 %v511_v33, %v447_v18  ;;  %v176_v35 = vpop.f32.mrb[5].mxu0 }
  0xe7   :  { %v177_v36 = vadd.f32 %v447_v18, %v176_v35  ;;  %v512_v37 = vpop.f32.mrb[6].mxu0  ;;  %537 = vmatprep.mubr.bf16.mxu0 %v239_v32 }
  0xe8   :  { %v188_v38 = vadd.f32 %v512_v37, %v447_v18  ;;  %v179_v39 = vpop.f32.mrb[7].mxu0  ;;  %538 = vmatmul.mubr.bf16.vlgmr.msra.gmra.mrb[16].mxu0 %v240_v31  ;;  %v229_v41 = vmax.f32 %v185_v34, 0.0 }
  0xe9   :  { %v180_v40 = vadd.f32 %v447_v18, %v179_v39  ;;  %v227_v43 = vmax.f32 %v177_v36, 0.0 }
  0xea   :  { %v230_v42 = vmax.f32 %v188_v38, 0.0 }
  0xeb   :  { %v228_v44 = vmax.f32 %v180_v40, 0.0 }
  0xec   :  { %v242_v45 = vpack.c.bf16 %v230_v42, %v229_v41 }
  0xed   :  { %v515_v46 = vpop.f32.mrb[8].mxu0  ;;  %v241_v47 = vpack.c.bf16 %v228_v44, %v227_v43 }
  0xee   :  { %v201_v48 = vadd.f32 %v515_v46, %v447_v18  ;;  %v192_v49 = vpop.f32.mrb[9].mxu0 }
  0xef   :  { %v193_v50 = vadd.f32 %v447_v18, %v192_v49  ;;  %v516_v51 = vpop.f32.mrb[10].mxu0  ;;  %541 = vmatprep.mubr.bf16.mxu1 %v241_v47 }
  0xf0   :  { %v204_v52 = vadd.f32 %v516_v51, %v447_v18  ;;  %v195_v53 = vpop.f32.mrb[11].mxu0  ;;  %542 = vmatmul.mubr.bf16.vlgmr.msra.gmra.mrb[0].mxu1 %v242_v45  ;;  %v233_v55 = vmax.f32 %v201_v48, 0.0 }
  0xf1   :  { %v196_v54 = vadd.f32 %v447_v18, %v195_v53  ;;  %v231_v57 = vmax.f32 %v193_v50, 0.0 }
  0xf2   :  { %v234_v56 = vmax.f32 %v204_v52, 0.0 }
  0xf3   :  { %v232_v58 = vmax.f32 %v196_v54, 0.0 }
  0xf4   :  { %v244_v59 = vpack.c.bf16 %v234_v56, %v233_v55 }
  0xf5   :  { %v243_v60 = vpack.c.bf16 %v232_v58, %v231_v57  ;;  %v519_v61 = vpop.f32.mrb[12].mxu0 }
  0xf6   :  { %v217_v62 = vadd.f32 %v519_v61, %v447_v18  ;;  %v208_v63 = vpop.f32.mrb[13].mxu0 }
  0xf7   :  { %v209_v0 = vadd.f32 %v447_v18, %v208_v63  ;;  %v520_v1 = vpop.f32.mrb[14].mxu0  ;;  %545 = vmatprep.mubr.bf16.mxu1 %v243_v60 }
  0xf8   :  { %v220_v2 = vadd.f32 %v520_v1, %v447_v18  ;;  %v211_v3 = vpop.f32.mrb[15].mxu0  ;;  %546 = vmatmul.mubr.bf16.gmra.mrb[4].mxu1 %v244_v59  ;;  %v237_v5 = vmax.f32 %v217_v62, 0.0 }
  0xf9   :  { %v212_v4 = vadd.f32 %v447_v18, %v211_v3  ;;  %v235_v7 = vmax.f32 %v209_v0, 0.0 }
  0xfa   :  { %v238_v6 = vmax.f32 %v220_v2, 0.0 }
  0xfb   :  { %v236_v8 = vmax.f32 %v212_v4, 0.0 }
  0xfc   :  { %v246_v9 = vpack.c.bf16 %v238_v6, %v237_v5 }
  0xfd   :  { %v245_v10 = vpack.c.bf16 %v236_v8, %v235_v7 }
  0xff   :  { %549 = vmatprep.mubr.bf16.mxu1 %v245_v10 }
 0x100   :  { %550 = vmatmul.mubr.bf16.gmra.mrb[8].mxu1 %v246_v9 }
 0x1bb   :  { %v539_v12 = vpop.f32.mrb[16].mxu0 }
 0x1bc   :  { %v361_v13 = vadd.f32 %v539_v12, %v466_v11  ;;  %v352_v14 = vpop.f32.mrb[17].mxu0 }
 0x1bd   :  { %v353_v15 = vadd.f32 %v466_v11, %v352_v14  ;;  %v540_v16 = vpop.f32.mrb[18].mxu0 }
 0x1be   :  { %417 = vst [vmem:[#allocation2 + $0x10] sm:$0xff] %v361_v13  ;;  %v364_v17 = vadd.f32 %v540_v16, %v466_v11  ;;  %v355_v18 = vpop.f32.mrb[19].mxu0 }
 0x1bf   :  { %415 = vst [vmem:[#allocation2] sm:$0xff] %v353_v15  ;;  %v356_v19 = vadd.f32 %v466_v11, %v355_v18 }
 0x1c0   :  { %418 = vst [vmem:[#allocation2 + $0x18] sm:$0xff] %v364_v17 }
 0x1c1   :  { %416 = vst [vmem:[#allocation2 + $0x8] sm:$0xff] %v356_v19 }
 0x1c3   :  { %v543_v20 = vpop.f32.mrb[0].mxu1 }
 0x1c4   :  { %v377_v21 = vadd.f32 %v543_v20, %v466_v11  ;;  %v368_v22 = vpop.f32.mrb[1].mxu1 }
 0x1c5   :  { %v369_v23 = vadd.f32 %v466_v11, %v368_v22  ;;  %v544_v24 = vpop.f32.mrb[2].mxu1 }
 0x1c6   :  { %421 = vst [vmem:[#allocation2 + $0x30] sm:$0xff] %v377_v21  ;;  %v380_v25 = vadd.f32 %v544_v24, %v466_v11  ;;  %v371_v26 = vpop.f32.mrb[3].mxu1 }
 0x1c7   :  { %419 = vst [vmem:[#allocation2 + $0x20] sm:$0xff] %v369_v23  ;;  %v372_v27 = vadd.f32 %v466_v11, %v371_v26 }
 0x1c8   :  { %422 = vst [vmem:[#allocation2 + $0x38] sm:$0xff] %v380_v25 }
 0x1c9   :  { %420 = vst [vmem:[#allocation2 + $0x28] sm:$0xff] %v372_v27 }
 0x1cb   :  { %v547_v28 = vpop.f32.mrb[4].mxu1 }
 0x1cc   :  { %v393_v29 = vadd.f32 %v547_v28, %v466_v11  ;;  %v384_v30 = vpop.f32.mrb[5].mxu1 }
 0x1cd   :  { %v385_v31 = vadd.f32 %v466_v11, %v384_v30  ;;  %v548_v32 = vpop.f32.mrb[6].mxu1 }
 0x1ce   :  { %425 = vst [vmem:[#allocation2 + $0x50] sm:$0xff] %v393_v29  ;;  %v396_v33 = vadd.f32 %v548_v32, %v466_v11  ;;  %v387_v34 = vpop.f32.mrb[7].mxu1 }
 0x1cf   :  { %423 = vst [vmem:[#allocation2 + $0x40] sm:$0xff] %v385_v31  ;;  %v388_v35 = vadd.f32 %v466_v11, %v387_v34 }
 0x1d0   :  { %426 = vst [vmem:[#allocation2 + $0x58] sm:$0xff] %v396_v33 }
 0x1d1   :  { %424 = vst [vmem:[#allocation2 + $0x48] sm:$0xff] %v388_v35 }
 0x1d3   :  { %v551_v36 = vpop.f32.mrb[8].mxu1 }
 0x1d4   :  { %v409_v37 = vadd.f32 %v551_v36, %v466_v11  ;;  %v400_v38 = vpop.f32.mrb[9].mxu1 }
 0x1d5   :  { %v401_v39 = vadd.f32 %v466_v11, %v400_v38  ;;  %v552_v40 = vpop.f32.mrb[10].mxu1 }
 0x1d6   :  { %429 = vst [vmem:[#allocation2 + $0x70] sm:$0xff] %v409_v37  ;;  %v412_v41 = vadd.f32 %v552_v40, %v466_v11  ;;  %v403_v42 = vpop.f32.mrb[11].mxu1 }
 0x1d7   :  { %427 = vst [vmem:[#allocation2 + $0x60] sm:$0xff] %v401_v39  ;;  %v404_v43 = vadd.f32 %v466_v11, %v403_v42 }
 0x1d8   :  { %430 = vst [vmem:[#allocation2 + $0x78] sm:$0xff] %v412_v41 }
 0x1d9   :  { %428 = vst [vmem:[#allocation2 + $0x68] sm:$0xff] %v404_v43 }
 0x1da   :  { %601 = shalt.err (!%p598_p4)
}
 0x1db   :  { %s602_s7 = scalar_lea.hbm %s732_s5, 2048 }
 0x1dc   :  { %p603_p5 = scmp.ne.s32.totalorder %s732_s5, %s602_s7  ;;  %p606_p6 = scmp.lt.u32.totalorder %s602_s7, %s732_s5 }
 0x1de   :  { %p608_p7 = pnand %p606_p6, %p603_p5 }
 0x1e0   :  { %611 = shalt.err (!%p608_p7)
}
 0x1e1   :  { %s615_s12 = smov 128   ;;  %s616_s13 = smov 8  }
 0x1e2   :  { %442 = dma.vmem_to_hbm [thread:$0]  %s437_s28, 2048, %s732_s5, [#allocation3], %s615_s12, %s615_s12, %s616_s13  }
 0x1e3   :  { %612 = dma.done.wait [#allocation3], 2048  }
 0x1e4   :  { %613 = vsyncadd [#allocation3], 4294965248 }
 0x1e5   :  { %446 = vsyncpa [#allocation3], 1 }

</bundles_post_ra>
